<compile_context>
chip_gen: v7x
topology: tpu7x:2x2x1
jax: 0.10.0
libtpu: 0.0.40
codegen_flags: <defaults>
</compile_context>

<pallas_src>
import jax
import jax.numpy as jnp
from jax.experimental import pallas as pl
from jax.experimental.pallas import tpu as pltpu

BETA = 0.9
GAMMA = -0.1
EPSILON = 2.0

# Scoped-VMEM budget: safe on v5e/v6e (128 MiB) and v7x (64 MiB physical).
_VMEM_LIMIT_BYTES = 32 * 1024 * 1024

# Target tile sizes (f32): x tile 256*512*4 = 512 KiB, w tile 512*256*4 = 512 KiB,
# out/acc tile 256*256*4 = 256 KiB  ->  ~2.5 MiB live with double buffering.
_TM_MAX = 256
_TN_MAX = 256
_TK_MAX = 512


def _round_up(x, m):
    return ((x + m - 1) // m) * m


def _pick_tile(dim, unit, max_tile):
    """Largest tile that is a multiple of `unit`, <= max_tile, and divides the
    `unit`-rounded dimension.  Returns (tile, padded_dim)."""
    padded = _round_up(dim, unit)
    tile = unit
    for t in range(unit, min(max_tile, padded) + 1, unit):
        if padded % t == 0:
            tile = t
    return tile, padded


def _gate_kernel(loga_ref, u_ref, w_ref, weff_ref):
    """Elementwise gated weight: weff = clip(stretch(sigmoid(logit(u)+loga)), 0, 1) * w.

    loga_ref : SMEM (1,)     precomputed log(alpha) / beta
    u_ref    : VMEM (tk, tn) stochastic-gate logits
    w_ref    : VMEM (tk, tn) raw weights
    weff_ref : VMEM (tk, tn) gated weights
    """
    loga = loga_ref[0]
    u = u_ref[...]
    # logit via one log + one divide instead of two logs.
    s = jax.nn.sigmoid(jnp.log(u / (1.0 - u)) + loga)
    s_ = s * (EPSILON - GAMMA) + GAMMA
    # (s_>0)*s_ then (z>1)+(z<=1)*z  ==  clip(s_, 0, 1)
    z = jnp.clip(s_, 0.0, 1.0)
    weff_ref[...] = z * w_ref[...]


def _matmul_kernel(x_ref, w_ref, o_ref, acc_ref):
    """Tiled (tm,tk)@(tk,tn) matmul with f32 accumulator over the K grid axis."""
    @pl.when(pl.program_id(2) == 0)
    def _():
        acc_ref[...] = jnp.zeros_like(acc_ref)

    acc_ref[...] += jnp.dot(x_ref[...], w_ref[...],
                            preferred_element_type=jnp.float32)

    @pl.when(pl.program_id(2) == pl.num_programs(2) - 1)
    def _():
        o_ref[...] = acc_ref[...].astype(o_ref.dtype)


def high_layers_forward(x, u, w_params, alpha, *, use_bf16_matmul=False):
    """x: (A, N, C) f32; u, w_params: (C, D) f32; alpha: (1,) f32 -> (A, N, D) f32.

    use_bf16_matmul: cast x / gated weight to bf16 before the MXU (f32
    accumulation kept) — faster on v6e/v7x if the model tolerates it.
    """
    A, N, C = x.shape
    D = u.shape[1]
    M = A * N

    unit_m = 16 if use_bf16_matmul else 8        # bf16 packs (16,128) sublanes
    tm, Mp = _pick_tile(M, unit_m, _TM_MAX)
    tn, Dp = _pick_tile(D, 128, _TN_MAX)         # lane-dense output tiles
    tk, Cp = _pick_tile(C, 128, _TK_MAX)

    # Precompute scalar log(alpha)/beta outside the kernel (one EUP op total).
    loga = (jnp.log(alpha) / BETA).astype(jnp.float32)      # shape (1,)

    x2d = x.reshape(M, C)
    if (Mp, Cp) != (M, C):
        x2d = jnp.pad(x2d, ((0, Mp - M), (0, Cp - C)))
    up, wp = u, w_params
    if (Cp, Dp) != (C, D):
        # Pad u with 0.5 (finite logit) and w with 0 -> padded gated weight is 0,
        # so zero-padded K/D regions contribute nothing to the matmul.
        up = jnp.pad(u, ((0, Cp - C), (0, Dp - D)), constant_values=0.5)
        wp = jnp.pad(w_params, ((0, Cp - C), (0, Dp - D)))

    # ---- stage 1: gated weight, computed once (O(C*D)) -------------------
    w_eff = pl.pallas_call(
        _gate_kernel,
        out_shape=jax.ShapeDtypeStruct((Cp, Dp), jnp.float32),
        grid_spec=pltpu.PrefetchScalarGridSpec(
            num_scalar_prefetch=0,
            grid=(Cp // tk, Dp // tn),
            in_specs=[
                pl.BlockSpec(memory_space=pltpu.MemorySpace.SMEM),   # log(alpha)/beta
                pl.BlockSpec((tk, tn), lambda c, d: (c, d)),         # u
                pl.BlockSpec((tk, tn), lambda c, d: (c, d)),         # w_params
            ],
            out_specs=pl.BlockSpec((tk, tn), lambda c, d: (c, d)),
        ),
        compiler_params=pltpu.CompilerParams(
            dimension_semantics=("parallel", "parallel"),
            vmem_limit_bytes=_VMEM_LIMIT_BYTES),
        cost_estimate=pl.CostEstimate(
            flops=8 * Cp * Dp,
            transcendentals=2 * Cp * Dp,
            bytes_accessed=4 * 3 * Cp * Dp),
    )(loga, up, wp)

    if use_bf16_matmul:
        x2d = x2d.astype(jnp.bfloat16)
        w_eff = w_eff.astype(jnp.bfloat16)

    # ---- stage 2: tiled matmul (P1 pipelining + P3 accumulator) ----------
    out2d = pl.pallas_call(
        _matmul_kernel,
        out_shape=jax.ShapeDtypeStruct((Mp, Dp), jnp.float32),
        grid_spec=pltpu.PrefetchScalarGridSpec(
            num_scalar_prefetch=0,
            grid=(Mp // tm, Dp // tn, Cp // tk),        # reduction axis last
            in_specs=[
                pl.BlockSpec((tm, tk), lambda i, j, k: (i, k)),      # x
                pl.BlockSpec((tk, tn), lambda i, j, k: (k, j)),      # w_eff
            ],
            out_specs=pl.BlockSpec((tm, tn), lambda i, j, k: (i, j)),
            scratch_shapes=[pltpu.VMEM((tm, tn), jnp.float32)],
        ),
        compiler_params=pltpu.CompilerParams(
            dimension_semantics=("parallel", "parallel", "arbitrary"),
            vmem_limit_bytes=_VMEM_LIMIT_BYTES),
        cost_estimate=pl.CostEstimate(
            flops=2 * Mp * Cp * Dp,
            transcendentals=0,
            bytes_accessed=(x2d.dtype.itemsize * Mp * Cp
                            + w_eff.dtype.itemsize * Cp * Dp
                            + 4 * Mp * Dp)),
    )(x2d, w_eff)

    return out2d[:M, :D].reshape(A, N, D)


def reference_forward(x, u, w_params, alpha):
    """Pure-JAX reference reproducing the PyTorch forward."""
    s = jax.nn.sigmoid(jnp.log(u) - jnp.log(1.0 - u) + jnp.log(alpha[0]) / BETA)
    s_ = s * (EPSILON - GAMMA) + GAMMA
    z = (s_ > 0).astype(jnp.float32) * s_
    z = (z > 1).astype(jnp.float32) + (z <= 1).astype(jnp.float32) * z
    w_eff = z * w_params
    return jnp.einsum("anc,cd->and", x, w_eff)


if __name__ == "__main__":
    key = jax.random.PRNGKey(0)

    def make_inputs(k, A, N, C, D):
        kx, ku, kw, ka = jax.random.split(k, 4)
        x = jax.random.normal(kx, (A, N, C), dtype=jnp.float32)
        # Parameter init mirroring __init__:
        #   u ~ Uniform(0,1), w_params ~ xavier_normal, alpha ~ Uniform(0,1) scalar.
        u = jax.random.uniform(ku, (C, D), dtype=jnp.float32,
                               minval=1e-3, maxval=1.0 - 1e-3)
        xavier_std = (2.0 / (C + D)) ** 0.5
        w = xavier_std * jax.random.normal(kw, (C, D), dtype=jnp.float32)
        alpha = jax.random.uniform(ka, (1,), dtype=jnp.float32,
                                   minval=0.1, maxval=1.0)
        return x, u, w, alpha

    k1, k2 = jax.random.split(key)

    # Small shapes consistent with einsum 'anc,cd->and': batch=2, seq=8, C=D=32.
    x, u, w, alpha = make_inputs(k1, A=2, N=8, C=32, D=32)
    out = jax.block_until_ready(high_layers_forward(x, u, w, alpha))
    ref = reference_forward(x, u, w, alpha)
    assert out.shape == ref.shape
    assert jnp.allclose(out, ref, atol=1e-4, rtol=1e-4), "mismatch vs reference (small)"

    # Larger shape exercising multi-tile grid, K-axis accumulation and padding.
    x, u, w, alpha = make_inputs(k2, A=2, N=70, C=640, D=200)
    out = jax.block_until_ready(high_layers_forward(x, u, w, alpha))
    ref = reference_forward(x, u, w, alpha)
    assert out.shape == ref.shape
    # Lenient tolerance: MXU f32 pass precision may differ from XLA's einsum.
    assert jnp.allclose(out, ref, atol=1e-2, rtol=1e-2), "mismatch vs reference (large)"

    print("KERNEL_OK")
</pallas_src>

<mosaic_0001>
module attributes {stable_mosaic.version = 11 : i64} {
  func.func @_gate_kernel(%arg0: i32, %arg1: i32, %arg2: memref<1xf32, #tpu.memory_space<smem>>, %arg3: memref<128x128xf32, #tpu.memory_space<vmem>>, %arg4: memref<128x128xf32, #tpu.memory_space<vmem>>, %arg5: memref<128x128xf32, #tpu.memory_space<vmem>>) attributes {dimension_semantics = [#tpu.dimension_semantics<parallel>, #tpu.dimension_semantics<parallel>], iteration_bounds = array<i64: 1, 1>, scalar_prefetch = 0 : i64, scratch_operands = 0 : i64, tpu.core_type = #tpu.core_type<tc>, window_params = [{transform_indices = @transform_0, window_bounds = array<i64: 1>}, {transform_indices = @transform_1, window_bounds = array<i64: 128, 128>}, {transform_indices = @transform_2, window_bounds = array<i64: 128, 128>}, {transform_indices = @transform_3, window_bounds = array<i64: 128, 128>}]} {
    %c0 = arith.constant 0 : index
    %0 = memref.load %arg2[%c0] : memref<1xf32, #tpu.memory_space<smem>>
    %c0_0 = arith.constant 0 : index
    %c0_1 = arith.constant 0 : index
    %1 = vector.load %arg3[%c0_0, %c0_1] : memref<128x128xf32, #tpu.memory_space<vmem>>, vector<128x128xf32>
    %cst = arith.constant 1.000000e+00 : f32
    %2 = vector.broadcast %cst : f32 to vector<128x128xf32>
    %3 = arith.subf %2, %1 : vector<128x128xf32>
    %4 = arith.divf %1, %3 : vector<128x128xf32>
    %5 = math.log %4 : vector<128x128xf32>
    %6 = vector.broadcast %0 : f32 to vector<128x128xf32>
    %7 = arith.addf %5, %6 : vector<128x128xf32>
    %8 = arith.negf %7 : vector<128x128xf32>
    %9 = math.exp %8 : vector<128x128xf32>
    %cst_2 = arith.constant 1.000000e+00 : f32
    %10 = vector.broadcast %cst_2 : f32 to vector<128x128xf32>
    %11 = arith.addf %10, %9 : vector<128x128xf32>
    %12 = arith.divf %10, %11 : vector<128x128xf32>
    %cst_3 = arith.constant 2.100000e+00 : f32
    %13 = vector.broadcast %cst_3 : f32 to vector<128x128xf32>
    %14 = arith.mulf %12, %13 : vector<128x128xf32>
    %cst_4 = arith.constant -1.000000e-01 : f32
    %15 = vector.broadcast %cst_4 : f32 to vector<128x128xf32>
    %16 = arith.addf %14, %15 : vector<128x128xf32>
    %cst_5 = arith.constant 0.000000e+00 : f32
    %cst_6 = arith.constant 1.000000e+00 : f32
    %17 = vector.broadcast %cst_5 : f32 to vector<128x128xf32>
    %18 = arith.maximumf %17, %16 : vector<128x128xf32>
    %19 = vector.broadcast %cst_6 : f32 to vector<128x128xf32>
    %20 = arith.minimumf %19, %18 : vector<128x128xf32>
    %c0_7 = arith.constant 0 : index
    %c0_8 = arith.constant 0 : index
    %21 = vector.load %arg4[%c0_7, %c0_8] : memref<128x128xf32, #tpu.memory_space<vmem>>, vector<128x128xf32>
    %22 = arith.mulf %20, %21 : vector<128x128xf32>
    %c0_9 = arith.constant 0 : index
    %c0_10 = arith.constant 0 : index
    %23 = vector.load %arg5[%c0_9, %c0_10] : memref<128x128xf32, #tpu.memory_space<vmem>>, vector<128x128xf32>
    tpu.vector_store %arg5[%c0_9, %c0_10], %22 {strides = array<i32>} : memref<128x128xf32, #tpu.memory_space<vmem>>, vector<128x128xf32>,
    return
  }
  func.func @transform_0(%arg0: i32, %arg1: i32) -> i32 {
    %c0_i32 = arith.constant 0 : i32
    %c0_i32_0 = arith.constant 0 : i32
    return %c0_i32 : i32
  }
  func.func @transform_1(%arg0: i32, %arg1: i32) -> (i32, i32) {
    %c0_i32 = arith.constant 0 : i32
    return %arg0, %arg1 : i32, i32
  }
  func.func @transform_2(%arg0: i32, %arg1: i32) -> (i32, i32) {
    %c0_i32 = arith.constant 0 : i32
    return %arg0, %arg1 : i32, i32
  }
  func.func @transform_3(%arg0: i32, %arg1: i32) -> (i32, i32) {
    %c0_i32 = arith.constant 0 : i32
    return %arg0, %arg1 : i32, i32
  }
}

</mosaic_0001>

<bundles_post_ra>
// kernel: tpu_custom_call.1
= control target key start
LH: loop header
LB: loop body
LE: loop exit
PB: predicated region body
PF: predicated region fallthrough
CT: control target
= control target key end

     0   :  { %9 = vsyncpa [#allocation4], 0  ;;  %s708_s0 = inlined_call_operand.<no memory space> [shape: f32[1], index: 0, kind: input, shape index: {}]   ;;  %s709_s1 = inlined_call_operand.hbm [shape: f32[128,128], index: 1, kind: input, shape index: {}]   ;;  %s710_s2 = inlined_call_operand.hbm [shape: f32[128,128], index: 2, kind: input, shape index: {}]   ;;  %s711_s3 = inlined_call_operand.hbm [shape: f32[128,128], index: 3, kind: output, shape index: {}]  }
   0x1   :  { %10 = vsyncpa [#allocation7], 0 }
   0x2   :  { %11 = vsyncpa [#allocation5], 0  ;;  %s605_s12 = smov [#allocation3]   ;;  %s533_s16 = scalar_lea.hbm %s709_s1, 2048 }
   0x3   :  { %s19_s13 = sshll.u32 %s605_s12, 4  ;;  %p534_p0 = scmp.ne.s32.totalorder %s709_s1, %s533_s16  ;;  %s20_s13 = int_to_ptr.vmem [resolvable:$true] %s19_s13 }
   0x4   :  { %p537_p1 = scmp.lt.u32.totalorder %s533_s16, %s709_s1 }
   0x6   :  { %p539_p2 = pnand %p537_p1, %p534_p0 }
   0x8   :  { %542 = shalt.err (!%p539_p2)
}
   0x9   :  { %s543_s21 = scalar_lea.vmem %s20_s13, 2048  ;;  %p548_p4 = scmp.lt.s32.totalorder %s20_s13, %s20_s13 }
   0xa   :  { %p544_p3 = scmp.ne.s32.totalorder %s20_s13, %s543_s21  ;;  %p549_p5 = scmp.lt.s32.totalorder %s543_s21, %s543_s21 }
   0xc   :  { %p550_p6 = por %p549_p5, %p548_p4 }
   0xe   :  { %p551_p7 = pnand %p550_p6, %p544_p3 }
  0x10   :  { %554 = shalt.err (!%p551_p7)
}
  0x11   :  { %s606_s22 = smov 128   ;;  %s607_s23 = smov 8  }
  0x12   :  { %25 = dma.hbm_to_vmem [thread:$0]  %s709_s1, 2048, %s20_s13, [#allocation4], %s606_s22, %s606_s22, %s607_s23  }
  0x13   :  { %s608_s26 = smov [#allocation6]   ;;  %s555_s30 = scalar_lea.hbm %s710_s2, 2048 }
  0x14   :  { %s31_s27 = sshll.u32 %s608_s26, 4  ;;  %p556_p8 = scmp.ne.s32.totalorder %s710_s2, %s555_s30  ;;  %s32_s27 = int_to_ptr.vmem [resolvable:$true] %s31_s27 }
  0x15   :  { %p559_p9 = scmp.lt.u32.totalorder %s555_s30, %s710_s2 }
  0x17   :  { %p561_p10 = pnand %p559_p9, %p556_p8 }
  0x19   :  { %564 = shalt.err (!%p561_p10)
}
  0x1a   :  { %s565_s8 = scalar_lea.vmem %s32_s27, 2048  ;;  %p570_p12 = scmp.lt.s32.totalorder %s32_s27, %s32_s27 }
  0x1b   :  { %p566_p11 = scmp.ne.s32.totalorder %s32_s27, %s565_s8  ;;  %p571_p13 = scmp.lt.s32.totalorder %s565_s8, %s565_s8 }
  0x1d   :  { %p572_p0 = por %p571_p13, %p570_p12 }
  0x1f   :  { %p573_p1 = pnand %p572_p0, %p566_p11 }
  0x21   :  { %576 = shalt.err (!%p573_p1)
}
  0x22   :  { %37 = dma.hbm_to_vmem [thread:$0]  %s710_s2, 2048, %s32_s27, [#allocation7], %s606_s22, %s606_s22, %s607_s23  }
  0x23   :  { %599 = dma.done.wait [#allocation4], 2048  }
  0x24   :  { %600 = vsyncadd [#allocation4], 4294965248 }
  0x25   :  { %601 = dma.done.wait [#allocation7], 2048  }
  0x26   :  { %602 = vsyncadd [#allocation7], 4294965248  ;;  %v45_v0 = vld [vmem:[#allocation3] sm:$0xff]  ;;  %v46_v1 = vld [vmem:[#allocation3 + $0x8] sm:$0xff]  ;;  %v669_v55 = vstv %s708_s0  ;;  %s609_s0 = smov [#allocation8]  }
  0x27   :  { %v61_v2 = vsub.f32 1.0, %v45_v0  ;;  %v62_v3 = vsub.f32 1.0, %v46_v1  ;;  %v47_v4 = vld [vmem:[#allocation3 + $0x10] sm:$0xff]  ;;  %v48_v6 = vld [vmem:[#allocation3 + $0x18] sm:$0xff]  ;;  %v49_v7 = vld [vmem:[#allocation3 + $0x20] sm:$0xff]  ;;  %s371_s11 = sshll.u32 %s609_s0, 4  ;;  %s372_s11 = int_to_ptr.vmem [resolvable:$true] %s371_s11 }
  0x28   :  { %v63_v5 = vsub.f32 1.0, %v47_v4  ;;  %v64_v8 = vsub.f32 1.0, %v48_v6  ;;  %v65_v9 = vsub.f32 1.0, %v49_v7  ;;  %v50_v10 = vld [vmem:[#allocation3 + $0x28] sm:$0xff]  ;;  %v51_v12 = vld [vmem:[#allocation3 + $0x30] sm:$0xff]  ;;  %v52_v13 = vld [vmem:[#allocation3 + $0x38] sm:$0xff]  ;;  %p582_p3 = scmp.lt.s32.totalorder %s372_s11, %s372_s11 }
  0x29   :  { %405 = vrcp.f32 %v61_v2  ;;  %v66_v11 = vsub.f32 1.0, %v50_v10  ;;  %v67_v14 = vsub.f32 1.0, %v51_v12  ;;  %v53_v15 = vld [vmem:[#allocation3 + $0x40] sm:$0xff]  ;;  %v68_v16 = vsub.f32 1.0, %v52_v13  ;;  %v54_v17 = vld [vmem:[#allocation3 + $0x48] sm:$0xff]  ;;  %v55_v18 = vld [vmem:[#allocation3 + $0x50] sm:$0xff] }
  0x2a   :  { %407 = vrcp.f32 %v62_v3  ;;  %v69_v19 = vsub.f32 1.0, %v53_v15  ;;  %v56_v20 = vld [vmem:[#allocation3 + $0x58] sm:$0xff]  ;;  %v70_v21 = vsub.f32 1.0, %v54_v17  ;;  %v57_v22 = vld [vmem:[#allocation3 + $0x60] sm:$0xff]  ;;  %v71_v23 = vsub.f32 1.0, %v55_v18  ;;  %v660_v47 = vld [vmem:[#allocation3 + $0x68] sm:$0xff] }
  0x2b   :  { %409 = vrcp.f32 %v63_v5  ;;  %v72_v24 = vsub.f32 1.0, %v56_v20  ;;  %v73_v25 = vsub.f32 1.0, %v57_v22  ;;  %v662_v50 = vld [vmem:[#allocation3 + $0x70] sm:$0xff]  ;;  %v664_v53 = vld [vmem:[#allocation3 + $0x78] sm:$0xff]  ;;  %v74_v57 = vsub.f32 1.0, %v660_v47  ;;  %s577_s12 = scalar_lea.vmem %s372_s11, 2048 }
  0x2c   :  { %411 = vrcp.f32 %v64_v8  ;;  %v75_v60 = vsub.f32 1.0, %v662_v50  ;;  %v76_v63 = vsub.f32 1.0, %v664_v53  ;;  %p578_p2 = scmp.ne.s32.totalorder %s372_s11, %s577_s12  ;;  %p583_p4 = scmp.lt.s32.totalorder %s577_s12, %s577_s12 }
  0x2d   :  { %413 = vrcp.f32 %v65_v9 }
  0x2e   :  { %415 = vrcp.f32 %v66_v11  ;;  %p584_p5 = por %p583_p4, %p582_p3 }
  0x2f   :  { %417 = vrcp.f32 %v67_v14 }
  0x30   :  { %419 = vrcp.f32 %v68_v16  ;;  %p585_p6 = pnand %p584_p5, %p578_p2 }
  0x31   :  { %421 = vrcp.f32 %v69_v19 }
  0x32   :  { %423 = vrcp.f32 %v70_v21 }
  0x33   :  { %v406_v26 = vpop.eup %405  ;;  %425 = vrcp.f32 %v71_v23 }
  0x34   :  { %v408_v27 = vpop.eup %407  ;;  %v78_v28 = vmul.f32 %v406_v26, %v45_v0  ;;  %427 = vrcp.f32 %v72_v24 }
  0x35   :  { %v410_v29 = vpop.eup %409  ;;  %v80_v30 = vmul.f32 %v408_v27, %v46_v1  ;;  %429 = vrcp.f32 %v73_v25 }
  0x36   :  { %v412_v31 = vpop.eup %411  ;;  %431 = vlog2.f32 %v78_v28  ;;  %v82_v32 = vmul.f32 %v410_v29, %v47_v4 }
  0x37   :  { %v414_v33 = vpop.eup %413  ;;  %433 = vlog2.f32 %v80_v30  ;;  %v84_v34 = vmul.f32 %v412_v31, %v48_v6 }
  0x38   :  { %v416_v35 = vpop.eup %415  ;;  %435 = vlog2.f32 %v82_v32  ;;  %v86_v36 = vmul.f32 %v414_v33, %v49_v7 }
  0x39   :  { %v418_v37 = vpop.eup %417  ;;  %437 = vlog2.f32 %v84_v34  ;;  %v88_v38 = vmul.f32 %v416_v35, %v50_v10 }
  0x3a   :  { %v420_v39 = vpop.eup %419  ;;  %439 = vlog2.f32 %v86_v36  ;;  %v90_v40 = vmul.f32 %v418_v37, %v51_v12 }
  0x3b   :  { %v422_v41 = vpop.eup %421  ;;  %441 = vlog2.f32 %v88_v38  ;;  %v92_v42 = vmul.f32 %v420_v39, %v52_v13 }
  0x3c   :  { %v424_v43 = vpop.eup %423  ;;  %443 = vlog2.f32 %v90_v40  ;;  %v94_v44 = vmul.f32 %v422_v41, %v53_v15 }
  0x3d   :  { %v426_v45 = vpop.eup %425  ;;  %445 = vlog2.f32 %v92_v42  ;;  %v96_v46 = vmul.f32 %v424_v43, %v54_v17 }
  0x3e   :  { %v428_v48 = vpop.eup %427  ;;  %447 = vlog2.f32 %v94_v44  ;;  %v98_v49 = vmul.f32 %v426_v45, %v55_v18 }
  0x3f   :  { %v430_v51 = vpop.eup %429  ;;  %449 = vlog2.f32 %v96_v46  ;;  %v100_v52 = vmul.f32 %v428_v48, %v56_v20 }
  0x40   :  { %v432_v54 = vpop.eup %431  ;;  %451 = vlog2.f32 %v98_v49  ;;  %v102_v56 = vmul.f32 %v430_v51, %v57_v22 }
  0x41   :  { %v434_v58 = vpop.eup %433  ;;  %v110_v59 = vmul.f32 0.6931472, %v432_v54  ;;  %453 = vlog2.f32 %v100_v52 }
  0x42   :  { %v436_v61 = vpop.eup %435  ;;  %v112_v62 = vmul.f32 0.6931472, %v434_v58  ;;  %455 = vlog2.f32 %v102_v56 }
  0x43   :  { %v438_v0 = vpop.eup %437  ;;  %v142_v1 = vadd.f32 %v669_v55, %v110_v59  ;;  %v114_v2 = vmul.f32 0.6931472, %v436_v61  ;;  %457 = vrcp.f32 %v74_v57 }
  0x44   :  { %v440_v3 = vpop.eup %439  ;;  %v143_v4 = vadd.f32 %v669_v55, %v112_v62  ;;  %v116_v5 = vmul.f32 0.6931472, %v438_v0  ;;  %459 = vrcp.f32 %v75_v60 }
  0x45   :  { %v442_v6 = vpop.eup %441  ;;  %v384_v7 = vmul.f32 -1.442695, %v142_v1  ;;  %v144_v8 = vadd.f32 %v669_v55, %v114_v2  ;;  %v118_v9 = vmul.f32 0.6931472, %v440_v3  ;;  %461 = vrcp.f32 %v76_v63 }
  0x46   :  { %v444_v10 = vpop.eup %443  ;;  %v385_v11 = vmul.f32 -1.442695, %v143_v4  ;;  %v145_v12 = vadd.f32 %v669_v55, %v116_v5  ;;  %v120_v13 = vmul.f32 0.6931472, %v442_v6 }
  0x47   :  { %v446_v14 = vpop.eup %445  ;;  %463 = vpow2.f32 %v384_v7  ;;  %v386_v15 = vmul.f32 -1.442695, %v144_v8  ;;  %v146_v16 = vadd.f32 %v669_v55, %v118_v9  ;;  %v122_v17 = vmul.f32 0.6931472, %v444_v10 }
  0x48   :  { %v448_v18 = vpop.eup %447  ;;  %465 = vpow2.f32 %v385_v11  ;;  %v387_v19 = vmul.f32 -1.442695, %v145_v12  ;;  %v147_v20 = vadd.f32 %v669_v55, %v120_v13  ;;  %v124_v21 = vmul.f32 0.6931472, %v446_v14 }
  0x49   :  { %v450_v22 = vpop.eup %449  ;;  %467 = vpow2.f32 %v386_v15  ;;  %v388_v23 = vmul.f32 -1.442695, %v146_v16  ;;  %v148_v24 = vadd.f32 %v669_v55, %v122_v17  ;;  %v126_v25 = vmul.f32 0.6931472, %v448_v18 }
  0x4a   :  { %v452_v26 = vpop.eup %451  ;;  %469 = vpow2.f32 %v387_v19  ;;  %v389_v27 = vmul.f32 -1.442695, %v147_v20  ;;  %v149_v28 = vadd.f32 %v669_v55, %v124_v21  ;;  %v128_v29 = vmul.f32 0.6931472, %v450_v22 }
  0x4b   :  { %v454_v30 = vpop.eup %453  ;;  %471 = vpow2.f32 %v388_v23  ;;  %v390_v31 = vmul.f32 -1.442695, %v148_v24  ;;  %v150_v32 = vadd.f32 %v669_v55, %v126_v25  ;;  %v130_v33 = vmul.f32 0.6931472, %v452_v26 }
  0x4c   :  { %v456_v34 = vpop.eup %455  ;;  %473 = vpow2.f32 %v389_v27  ;;  %v391_v35 = vmul.f32 -1.442695, %v149_v28  ;;  %v151_v36 = vadd.f32 %v669_v55, %v128_v29  ;;  %v132_v37 = vmul.f32 0.6931472, %v454_v30  ;;  %v318_v28 = vld [vmem:[#allocation6] sm:$0xff] }
  0x4d   :  { %475 = vpow2.f32 %v390_v31  ;;  %v392_v38 = vmul.f32 -1.442695, %v150_v32  ;;  %v152_v39 = vadd.f32 %v669_v55, %v130_v33  ;;  %v134_v40 = vmul.f32 0.6931472, %v456_v34  ;;  %v458_v41 = vpop.eup %457 }
  0x4e   :  { %477 = vpow2.f32 %v391_v35  ;;  %v393_v42 = vmul.f32 -1.442695, %v151_v36  ;;  %v153_v43 = vadd.f32 %v669_v55, %v132_v37  ;;  %v460_v44 = vpop.eup %459  ;;  %v104_v15 = vmul.f32 %v458_v41, %v660_v47  ;;  %v320_v35 = vld [vmem:[#allocation6 + $0x10] sm:$0xff] }
  0x4f   :  { %479 = vpow2.f32 %v392_v38  ;;  %v394_v45 = vmul.f32 -1.442695, %v152_v39  ;;  %v154_v46 = vadd.f32 %v669_v55, %v134_v40  ;;  %v462_v48 = vpop.eup %461  ;;  %v106_v18 = vmul.f32 %v460_v44, %v662_v50  ;;  %v319_v50 = vld [vmem:[#allocation6 + $0x8] sm:$0xff] }
  0x50   :  { %481 = vpow2.f32 %v393_v42  ;;  %v395_v49 = vmul.f32 -1.442695, %v153_v43  ;;  %v108_v21 = vmul.f32 %v462_v48, %v664_v53 }
  0x51   :  { %v464_v51 = vpop.eup %463  ;;  %483 = vpow2.f32 %v394_v45  ;;  %v396_v52 = vmul.f32 -1.442695, %v154_v46 }
  0x52   :  { %v466_v54 = vpop.eup %465  ;;  %v206_v56 = vadd.f32 1.0, %v464_v51  ;;  %485 = vpow2.f32 %v395_v49 }
  0x53   :  { %v468_v57 = vpop.eup %467  ;;  %v207_v58 = vadd.f32 1.0, %v466_v54  ;;  %487 = vpow2.f32 %v396_v52  ;;  %v321_v54 = vld [vmem:[#allocation6 + $0x18] sm:$0xff] }
  0x54   :  { %v470_v59 = vpop.eup %469  ;;  %489 = vrcp.f32 %v206_v56  ;;  %v208_v60 = vadd.f32 1.0, %v468_v57 }
  0x55   :  { %v472_v61 = vpop.eup %471  ;;  %491 = vrcp.f32 %v207_v58  ;;  %v209_v62 = vadd.f32 1.0, %v470_v59 }
  0x56   :  { %v474_v63 = vpop.eup %473  ;;  %493 = vrcp.f32 %v208_v60  ;;  %v210_v0 = vadd.f32 1.0, %v472_v61  ;;  %v322_v61 = vld [vmem:[#allocation6 + $0x20] sm:$0xff] }
  0x57   :  { %v476_v1 = vpop.eup %475  ;;  %495 = vrcp.f32 %v209_v62  ;;  %v211_v2 = vadd.f32 1.0, %v474_v63 }
  0x58   :  { %v478_v3 = vpop.eup %477  ;;  %497 = vrcp.f32 %v210_v0  ;;  %v212_v4 = vadd.f32 1.0, %v476_v1 }
  0x59   :  { %v480_v5 = vpop.eup %479  ;;  %499 = vrcp.f32 %v211_v2  ;;  %v213_v6 = vadd.f32 1.0, %v478_v3  ;;  %v323_v3 = vld [vmem:[#allocation6 + $0x28] sm:$0xff] }
  0x5a   :  { %v482_v7 = vpop.eup %481  ;;  %501 = vrcp.f32 %v212_v4  ;;  %v214_v8 = vadd.f32 1.0, %v480_v5 }
  0x5b   :  { %v484_v9 = vpop.eup %483  ;;  %503 = vrcp.f32 %v213_v6  ;;  %v215_v10 = vadd.f32 1.0, %v482_v7 }
  0x5c   :  { %v486_v11 = vpop.eup %485  ;;  %505 = vrcp.f32 %v214_v8  ;;  %v216_v12 = vadd.f32 1.0, %v484_v9  ;;  %v324_v9 = vld [vmem:[#allocation6 + $0x30] sm:$0xff] }
  0x5d   :  { %v488_v13 = vpop.eup %487  ;;  %507 = vrcp.f32 %v215_v10  ;;  %v217_v14 = vadd.f32 1.0, %v486_v11 }
  0x5e   :  { %v490_v16 = vpop.eup %489  ;;  %509 = vrcp.f32 %v216_v12  ;;  %v218_v17 = vadd.f32 1.0, %v488_v13 }
  0x5f   :  { %v492_v19 = vpop.eup %491  ;;  %v254_v20 = vmul.f32 2.1, %v490_v16  ;;  %511 = vrcp.f32 %v217_v14 }
  0x60   :  { %v494_v22 = vpop.eup %493  ;;  %v255_v23 = vmul.f32 2.1, %v492_v19  ;;  %513 = vrcp.f32 %v218_v17 }
  0x61   :  { %v496_v24 = vpop.eup %495  ;;  %v270_v25 = vadd.f32 -0.1, %v254_v20  ;;  %v256_v26 = vmul.f32 2.1, %v494_v22  ;;  %515 = vlog2.f32 %v104_v15  ;;  %v325_v15 = vld [vmem:[#allocation6 + $0x38] sm:$0xff] }
  0x62   :  { %v498_v27 = vpop.eup %497  ;;  %v271_v47 = vadd.f32 -0.1, %v255_v23  ;;  %v257_v29 = vmul.f32 2.1, %v496_v24  ;;  %517 = vlog2.f32 %v106_v18 }
  0x63   :  { %v500_v30 = vpop.eup %499  ;;  %v286_v31 = vmax.f32 %v270_v25, 0.0  ;;  %v272_v32 = vadd.f32 -0.1, %v256_v26  ;;  %v258_v33 = vmul.f32 2.1, %v498_v27  ;;  %519 = vlog2.f32 %v108_v21  ;;  %v326_v26 = vld [vmem:[#allocation6 + $0x40] sm:$0xff] }
  0x64   :  { %v502_v34 = vpop.eup %501  ;;  %v287_v53 = vmax.f32 %v271_v47, 0.0  ;;  %v273_v36 = vadd.f32 -0.1, %v257_v29  ;;  %v259_v37 = vmul.f32 2.1, %v500_v30  ;;  %v327_v30 = vld [vmem:[#allocation6 + $0x48] sm:$0xff] }
  0x65   :  { %v504_v38 = vpop.eup %503  ;;  %v302_v39 = vmin.f32 %v286_v31, 1.0  ;;  %v288_v40 = vmax.f32 %v272_v32, 0.0  ;;  %v274_v41 = vadd.f32 -0.1, %v258_v33  ;;  %v260_v42 = vmul.f32 2.1, %v502_v34 }
  0x66   :  { %v506_v43 = vpop.eup %505  ;;  %v303_v44 = vmin.f32 %v287_v53, 1.0  ;;  %v289_v45 = vmax.f32 %v273_v36, 0.0  ;;  %v275_v46 = vadd.f32 -0.1, %v259_v37  ;;  %v261_v48 = vmul.f32 2.1, %v504_v38 }
  0x67   :  { %v508_v49 = vpop.eup %507  ;;  %v334_v51 = vmul.f32 %v318_v28, %v302_v39  ;;  %v304_v52 = vmin.f32 %v288_v40, 1.0  ;;  %v290_v56 = vmax.f32 %v274_v41, 0.0  ;;  %v276_v57 = vadd.f32 -0.1, %v260_v42  ;;  %v328_v36 = vld [vmem:[#allocation6 + $0x50] sm:$0xff]  ;;  %v329_v42 = vld [vmem:[#allocation6 + $0x58] sm:$0xff] }
  0x68   :  { %v510_v58 = vpop.eup %509  ;;  %v335_v59 = vmul.f32 %v319_v50, %v303_v44  ;;  %v305_v60 = vmin.f32 %v289_v45, 1.0  ;;  %v291_v62 = vmax.f32 %v275_v46, 0.0  ;;  %v277_v63 = vadd.f32 -0.1, %v261_v48  ;;  %v330_v48 = vld [vmem:[#allocation6 + $0x60] sm:$0xff] }
  0x69   :  { %v512_v0 = vpop.eup %511  ;;  %350 = vst [vmem:[#allocation8] sm:$0xff] %v334_v51  ;;  %v336_v1 = vmul.f32 %v320_v35, %v304_v52  ;;  %v306_v2 = vmin.f32 %v290_v56, 1.0  ;;  %v292_v4 = vmax.f32 %v276_v57, 0.0  ;;  %v262_v5 = vmul.f32 2.1, %v506_v43 }
  0x6a   :  { %v514_v6 = vpop.eup %513  ;;  %351 = vst [vmem:[#allocation8 + $0x8] sm:$0xff] %v335_v59  ;;  %v337_v7 = vmul.f32 %v321_v54, %v305_v60  ;;  %v307_v8 = vmin.f32 %v291_v62, 1.0  ;;  %v293_v10 = vmax.f32 %v277_v63, 0.0  ;;  %v263_v11 = vmul.f32 2.1, %v508_v49 }
  0x6b   :  { %v516_v12 = vpop.eup %515  ;;  %352 = vst [vmem:[#allocation8 + $0x10] sm:$0xff] %v336_v1  ;;  %v338_v13 = vmul.f32 %v322_v61, %v306_v2  ;;  %v308_v14 = vmin.f32 %v292_v4, 1.0  ;;  %v278_v16 = vadd.f32 -0.1, %v262_v5  ;;  %v264_v17 = vmul.f32 2.1, %v510_v58 }
  0x6c   :  { %v518_v18 = vpop.eup %517  ;;  %353 = vst [vmem:[#allocation8 + $0x18] sm:$0xff] %v337_v7  ;;  %v339_v19 = vmul.f32 %v323_v3, %v307_v8  ;;  %v309_v20 = vmin.f32 %v293_v10, 1.0  ;;  %v279_v21 = vadd.f32 -0.1, %v263_v11  ;;  %v265_v22 = vmul.f32 2.1, %v512_v0 }
  0x6d   :  { %v520_v23 = vpop.eup %519  ;;  %354 = vst [vmem:[#allocation8 + $0x20] sm:$0xff] %v338_v13  ;;  %v340_v24 = vmul.f32 %v324_v9, %v308_v14  ;;  %v294_v25 = vmax.f32 %v278_v16, 0.0  ;;  %v280_v27 = vadd.f32 -0.1, %v264_v17  ;;  %v266_v28 = vmul.f32 2.1, %v514_v6 }
  0x6e   :  { %355 = vst [vmem:[#allocation8 + $0x28] sm:$0xff] %v339_v19  ;;  %v341_v47 = vmul.f32 %v325_v15, %v309_v20  ;;  %v295_v29 = vmax.f32 %v279_v21, 0.0  ;;  %v281_v31 = vadd.f32 -0.1, %v265_v22  ;;  %v136_v50 = vmul.f32 0.6931472, %v516_v12 }
  0x6f   :  { %356 = vst [vmem:[#allocation8 + $0x30] sm:$0xff] %v340_v24  ;;  %v310_v32 = vmin.f32 %v294_v25, 1.0  ;;  %v296_v33 = vmax.f32 %v280_v27, 0.0  ;;  %v282_v34 = vadd.f32 -0.1, %v266_v28  ;;  %v331_v11 = vld [vmem:[#allocation6 + $0x68] sm:$0xff] }
  0x70   :  { %v138_v53 = vmul.f32 0.6931472, %v518_v18  ;;  %357 = vst [vmem:[#allocation8 + $0x38] sm:$0xff] %v341_v47  ;;  %v311_v35 = vmin.f32 %v295_v29, 1.0  ;;  %v297_v37 = vmax.f32 %v281_v31, 0.0  ;;  %v155_v38 = vadd.f32 %v669_v55, %v136_v50  ;;  %v332_v14 = vld [vmem:[#allocation6 + $0x70] sm:$0xff] }
  0x71   :  { %v140_v39 = vmul.f32 0.6931472, %v520_v23  ;;  %v342_v40 = vmul.f32 %v326_v26, %v310_v32  ;;  %v312_v41 = vmin.f32 %v296_v33, 1.0  ;;  %v298_v43 = vmax.f32 %v282_v34, 0.0  ;;  %v333_v17 = vld [vmem:[#allocation6 + $0x78] sm:$0xff] }
  0x72   :  { %v156_v44 = vadd.f32 %v669_v55, %v138_v53  ;;  %v343_v45 = vmul.f32 %v327_v30, %v311_v35  ;;  %v313_v46 = vmin.f32 %v297_v37, 1.0  ;;  %v397_v49 = vmul.f32 -1.442695, %v155_v38 }
  0x73   :  { %v157_v51 = vadd.f32 %v669_v55, %v140_v39  ;;  %358 = vst [vmem:[#allocation8 + $0x40] sm:$0xff] %v342_v40  ;;  %v344_v52 = vmul.f32 %v328_v36, %v312_v41  ;;  %v314_v54 = vmin.f32 %v298_v43, 1.0 }
  0x74   :  { %v398_v56 = vmul.f32 -1.442695, %v156_v44  ;;  %359 = vst [vmem:[#allocation8 + $0x48] sm:$0xff] %v343_v45  ;;  %v345_v57 = vmul.f32 %v329_v42, %v313_v46  ;;  %521 = vpow2.f32 %v397_v49 }
  0x75   :  { %v399_v58 = vmul.f32 -1.442695, %v157_v51  ;;  %360 = vst [vmem:[#allocation8 + $0x50] sm:$0xff] %v344_v52  ;;  %v346_v59 = vmul.f32 %v330_v48, %v314_v54 }
  0x76   :  { %523 = vpow2.f32 %v398_v56  ;;  %361 = vst [vmem:[#allocation8 + $0x58] sm:$0xff] %v345_v57 }
  0x77   :  { %525 = vpow2.f32 %v399_v58  ;;  %362 = vst [vmem:[#allocation8 + $0x60] sm:$0xff] %v346_v59 }
  0x7e   :  { %v522_v60 = vpop.eup %521 }
  0x7f   :  { %v219_v62 = vadd.f32 1.0, %v522_v60 }
  0x80   :  { %v524_v61 = vpop.eup %523 }
  0x81   :  { %v526_v63 = vpop.eup %525  ;;  %v220_v0 = vadd.f32 1.0, %v524_v61  ;;  %527 = vrcp.f32 %v219_v62 }
  0x82   :  { %v221_v55 = vadd.f32 1.0, %v526_v63 }
  0x83   :  { %529 = vrcp.f32 %v220_v0 }
  0x84   :  { %531 = vrcp.f32 %v221_v55 }
  0x8b   :  { %v528_v1 = vpop.eup %527 }
  0x8c   :  { %v267_v3 = vmul.f32 2.1, %v528_v1 }
  0x8d   :  { %v530_v2 = vpop.eup %529 }
  0x8e   :  { %v532_v4 = vpop.eup %531  ;;  %v268_v5 = vmul.f32 2.1, %v530_v2  ;;  %v283_v6 = vadd.f32 -0.1, %v267_v3 }
  0x8f   :  { %v269_v7 = vmul.f32 2.1, %v532_v4 }
  0x90   :  { %v284_v8 = vadd.f32 -0.1, %v268_v5  ;;  %v299_v9 = vmax.f32 %v283_v6, 0.0 }
  0x91   :  { %v285_v10 = vadd.f32 -0.1, %v269_v7 }
  0x92   :  { %v300_v12 = vmax.f32 %v284_v8, 0.0  ;;  %v315_v13 = vmin.f32 %v299_v9, 1.0 }
  0x93   :  { %v301_v15 = vmax.f32 %v285_v10, 0.0 }
  0x94   :  { %v316_v16 = vmin.f32 %v300_v12, 1.0  ;;  %v347_v18 = vmul.f32 %v331_v11, %v315_v13 }
  0x95   :  { %v317_v19 = vmin.f32 %v301_v15, 1.0 }
  0x96   :  { %v348_v20 = vmul.f32 %v332_v14, %v316_v16  ;;  %363 = vst [vmem:[#allocation8 + $0x68] sm:$0xff] %v347_v18 }
  0x97   :  { %v349_v21 = vmul.f32 %v333_v17, %v317_v19 }
  0x98   :  { %364 = vst [vmem:[#allocation8 + $0x70] sm:$0xff] %v348_v20 }
  0x99   :  { %365 = vst [vmem:[#allocation8 + $0x78] sm:$0xff] %v349_v21 }
  0x9a   :  { %588 = shalt.err (!%p585_p6)
}
  0x9b   :  { %s589_s15 = scalar_lea.hbm %s711_s3, 2048 }
  0x9c   :  { %p590_p7 = scmp.ne.s32.totalorder %s711_s3, %s589_s15  ;;  %p593_p8 = scmp.lt.u32.totalorder %s589_s15, %s711_s3 }
  0x9e   :  { %p595_p9 = pnand %p593_p8, %p590_p7 }
  0xa0   :  { %598 = shalt.err (!%p595_p9)
}
  0xa1   :  { %377 = dma.vmem_to_hbm [thread:$0]  %s372_s11, 2048, %s711_s3, [#allocation5], %s606_s22, %s606_s22, %s607_s23  }
  0xa2   :  { %603 = dma.done.wait [#allocation5], 2048  }
  0xa3   :  { %604 = vsyncadd [#allocation5], 4294965248 }
  0xa4   :  { %381 = vsyncpa [#allocation4], 1 }
  0xa5   :  { %382 = vsyncpa [#allocation7], 1 }
  0xa6   :  { %383 = vsyncpa [#allocation5], 1 }

</bundles_post_ra>
